<compile_context>
chip_gen: v6e
topology: v6e:2x2x1
jax: 0.10.0
libtpu: 0.0.40
codegen_flags: <defaults>
</compile_context>

<pallas_src>
import functools
import math

import jax
import jax.numpy as jnp
from jax import lax
from jax.experimental import pallas as pl
from jax.experimental.pallas import tpu as pltpu


def _mha_kernel(x_ref, wqkv_ref, wout_ref, bout_ref, out_ref, attn_ref,
                *, n_head, head_size, scale, slopes, is_decoder):
    NH, H = n_head, head_size
    T = x_ref.shape[0]

    x = x_ref[...]                                             # (T, C), native dtype

    # Fused K/Q/V projection for ALL heads: one MXU pass, 3*NH*H output lanes.
    qkv = jnp.dot(x, wqkv_ref[...],
                  preferred_element_type=jnp.float32)          # (T, 3*NH*H) f32 accum
    q_all = qkv[:, :NH * H] * scale                            # scale on (T,NH*H), not (T,T)
    k_all = qkv[:, NH * H:2 * NH * H]
    v_all = qkv[:, 2 * NH * H:]

    # ALiBi relative-position matrix (and causal mask) generated in-kernel:
    # no HBM reads, no VMEM double-buffer for an (NH,T,T) bias tensor.
    col = lax.broadcasted_iota(jnp.int32, (T, T), 1)
    row = lax.broadcasted_iota(jnp.int32, (T, T), 0)
    rel = (col - row).astype(jnp.float32)                      # (T, T)
    causal = col > row

    p_heads = []
    y_heads = []
    for h in range(NH):                                        # static unroll; NH is small
        q = q_all[:, h * H:(h + 1) * H]
        k = k_all[:, h * H:(h + 1) * H]
        v = v_all[:, h * H:(h + 1) * H]

        # Scores: contract trailing dims of q and k directly (no k.T materialization).
        s = lax.dot_general(q, k, dimension_numbers=(((1,), (1,)), ((), ())),
                            preferred_element_type=jnp.float32)     # (T, T)
        s = s + slopes[h] * rel                                # slope is a compile-time const
        if is_decoder:
            s = jnp.where(causal, -jnp.inf, s)

        # Numerically stable softmax in f32.
        s_max = jnp.max(s, axis=-1, keepdims=True)
        p = jnp.exp(s - s_max)
        denom = jnp.sum(p, axis=-1, keepdims=True)
        p = p * pl.reciprocal(denom, approx=False)             # exact: weights are returned
        p_heads.append(p)

        y_heads.append(jnp.dot(p.astype(x.dtype), v.astype(x.dtype),
                               preferred_element_type=jnp.float32))  # (T, H)

    # One lane-denser (T, NH*T) f32 store instead of NH separate 8-lane masked stores.
    attn_ref[...] = jnp.concatenate(p_heads, axis=-1)

    # Fused output projection: the multi-head concat never leaves VMEM/vregs.
    y_cat = jnp.concatenate(y_heads, axis=-1).astype(x.dtype)  # (T, NH*H)
    out = jnp.dot(y_cat, wout_ref[...],
                  preferred_element_type=jnp.float32)          # (T, C)
    out_ref[...] = (out + bout_ref[...].astype(jnp.float32)).astype(out_ref.dtype)


def multi_head_attention_pallas(x, w_q, w_k, w_v, w_out, b_out, slopes,
                                *, is_decoder=False):
    """x: (B,T,C); w_q/w_k/w_v: (NH,C,H); w_out: (NH*H,C); b_out: (C,);
    slopes: length-NH sequence of Python floats (static ALiBi slopes).

    Returns (out (B,T,C) in x.dtype, attention_weights (B,NH,T,T) in f32).
    """
    B, T, C = x.shape
    NH, _, H = w_q.shape
    scale = float(H) ** -0.5
    slopes = tuple(float(s) for s in slopes)
    assert len(slopes) == NH

    # Fused weight, type-grouped [q_all | k_all | v_all]; column h*H+j of each
    # group is (head h, feature j).
    def to_cols(w):
        return jnp.transpose(w, (1, 0, 2)).reshape(C, NH * H)
    w_qkv = jnp.concatenate([to_cols(w_q), to_cols(w_k), to_cols(w_v)], axis=-1)
    b_out2 = b_out.reshape(1, C)

    kernel = functools.partial(_mha_kernel, n_head=NH, head_size=H,
                               scale=scale, slopes=slopes, is_decoder=is_decoder)

    grid_spec = pltpu.PrefetchScalarGridSpec(
        num_scalar_prefetch=0,
        grid=(B,),
        in_specs=[
            pl.BlockSpec((None, T, C), lambda b: (b, 0, 0)),        # x, batch b
            pl.BlockSpec((C, 3 * NH * H), lambda b: (0, 0)),        # fused qkv weight (resident)
            pl.BlockSpec((NH * H, C), lambda b: (0, 0)),            # out-proj weight (resident)
            pl.BlockSpec((1, C), lambda b: (0, 0)),                 # out-proj bias (resident)
        ],
        out_specs=[
            pl.BlockSpec((None, T, C), lambda b: (b, 0, 0)),        # fused projected output
            pl.BlockSpec((None, T, NH * T), lambda b: (b, 0, 0)),   # attention slab (lane-denser)
        ],
    )

    out, attn_slab = pl.pallas_call(
        kernel,
        grid_spec=grid_spec,
        out_shape=(
            jax.ShapeDtypeStruct((B, T, C), x.dtype),
            jax.ShapeDtypeStruct((B, T, NH * T), jnp.float32),
        ),
        compiler_params=pltpu.CompilerParams(
            dimension_semantics=("parallel",)),                     # v7x: 2 TCs split batches
    )(x, w_qkv, w_out, b_out2)

    # Layout plumbing only: (B, T, NH*T) -> (B, NH, T, T).
    attn = attn_slab.reshape(B, T, NH, T).transpose(0, 2, 1, 3)
    return out, attn


def _get_slopes(n):
    """ALiBi slopes, identical to the PyTorch module's get_slopes."""
    def power_of_2(n):
        start = 2.0 ** (-(2.0 ** -(math.log2(n) - 3)))
        ratio = start
        return [start * ratio ** i for i in range(n)]
    if math.log2(n).is_integer():
        return power_of_2(n)
    closest = 2 ** math.floor(math.log2(n))
    return power_of_2(closest) + _get_slopes(2 * closest)[0::2][: n - closest]


def _reference(x, w_q, w_k, w_v, w_out, b_out, slopes, *, is_decoder=False):
    """Pure-JAX reference matching the PyTorch forward (eval mode)."""
    B, T, C = x.shape
    NH, _, H = w_q.shape
    q = jnp.einsum('btc,nch->bnth', x, w_q)
    k = jnp.einsum('btc,nch->bnth', x, w_k)
    v = jnp.einsum('btc,nch->bnth', x, w_v)
    col = jnp.arange(T)[None, :]
    row = jnp.arange(T)[:, None]
    bias = slopes[:, None, None] * (col - row).astype(x.dtype)      # (NH, T, T)
    s = jnp.einsum('bnth,bnsh->bnts', q, k) * (H ** -0.5) + bias[None]
    if is_decoder:
        s = jnp.where((col > row)[None, None], -jnp.inf, s)
    p = jax.nn.softmax(s, axis=-1)                                  # (B, NH, T, T)
    y = jnp.einsum('bnts,bnsh->bnth', p, v)                         # (B, NH, T, H)
    y_cat = jnp.transpose(y, (0, 2, 1, 3)).reshape(B, T, NH * H)    # concat over heads
    out = y_cat @ w_out + b_out
    return out, p


if __name__ == "__main__":
    # Shapes consistent with the module: batch=2, block_size(T)=8, n_embd=32,
    # n_head=4, head_size=16, dropout=0.0 (eval mode -> identity).
    B, T, C = 2, 8, 32
    NH, H = 4, 16

    slopes = _get_slopes(NH)                       # Python floats (static buffers)

    key = jax.random.PRNGKey(0)
    kx, kq, kk, kv, ko, kb = jax.random.split(key, 6)
    x = jax.random.normal(kx, (B, T, C), dtype=jnp.float32)
    # nn.Linear(C, H, bias=False) weight is (H, C); stored transposed per head: (NH, C, H).
    sc = 1.0 / math.sqrt(C)
    w_q = jax.random.normal(kq, (NH, C, H), dtype=jnp.float32) * sc
    w_k = jax.random.normal(kk, (NH, C, H), dtype=jnp.float32) * sc
    w_v = jax.random.normal(kv, (NH, C, H), dtype=jnp.float32) * sc
    # nn.Linear(NH*H, C) weight is (C, NH*H); stored transposed (NH*H, C); bias (C,).
    w_out = jax.random.normal(ko, (NH * H, C), dtype=jnp.float32) / math.sqrt(NH * H)
    b_out = jax.random.normal(kb, (C,), dtype=jnp.float32) * 0.01

    for is_dec in (False, True):
        out, attn = multi_head_attention_pallas(
            x, w_q, w_k, w_v, w_out, b_out, slopes, is_decoder=is_dec)
        jax.block_until_ready((out, attn))
        out_ref, attn_ref = _reference(
            x, w_q, w_k, w_v, w_out, b_out,
            jnp.asarray(slopes, dtype=jnp.float32), is_decoder=is_dec)
        assert jnp.allclose(out, out_ref, atol=1e-4, rtol=1e-4), "output mismatch"
        assert jnp.allclose(attn, attn_ref, atol=1e-5, rtol=1e-4), "attention weights mismatch"

    print("KERNEL_OK")
</pallas_src>

<mosaic_0001>
module attributes {stable_mosaic.version = 11 : i64} {
  func.func @_mha_kernel(%arg0: i32, %arg1: memref<1x8x32xf32, #tpu.memory_space<vmem>>, %arg2: memref<32x192xf32, #tpu.memory_space<vmem>>, %arg3: memref<64x32xf32, #tpu.memory_space<vmem>>, %arg4: memref<1x32xf32, #tpu.memory_space<vmem>>, %arg5: memref<1x8x32xf32, #tpu.memory_space<vmem>>, %arg6: memref<1x8x32xf32, #tpu.memory_space<vmem>>) attributes {dimension_semantics = [#tpu.dimension_semantics<parallel>], iteration_bounds = array<i64: 2>, scalar_prefetch = 0 : i64, scratch_operands = 0 : i64, tpu.core_type = #tpu.core_type<tc>, window_params = [{transform_indices = @transform_0, window_bounds = array<i64: 1, 8, 32>}, {pipeline_mode = #tpu.pipeline_mode<synchronous>, transform_indices = @transform_1, window_bounds = array<i64: 32, 192>}, {pipeline_mode = #tpu.pipeline_mode<synchronous>, transform_indices = @transform_2, window_bounds = array<i64: 64, 32>}, {pipeline_mode = #tpu.pipeline_mode<synchronous>, transform_indices = @transform_3, window_bounds = array<i64: 1, 32>}, {transform_indices = @transform_4, window_bounds = array<i64: 1, 8, 32>}, {transform_indices = @transform_5, window_bounds = array<i64: 1, 8, 32>}]} {
    %c0 = arith.constant 0 : index
    %c0_0 = arith.constant 0 : index
    %c0_1 = arith.constant 0 : index
    %0 = vector.load %arg1[%c0, %c0_0, %c0_1] : memref<1x8x32xf32, #tpu.memory_space<vmem>>, vector<1x8x32xf32>
    %1 = vector.shape_cast %0 : vector<1x8x32xf32> to vector<8x32xf32>
    %c0_2 = arith.constant 0 : index
    %c0_3 = arith.constant 0 : index
    %2 = vector.load %arg2[%c0_2, %c0_3] : memref<32x192xf32, #tpu.memory_space<vmem>>, vector<32x192xf32>
    %cst = arith.constant dense<0.000000e+00> : vector<8x192xf32>
    %3 = tpu.matmul %1, %2, %cst {dimension_numbers = #tpu.dot_dimension_numbers<[1], [0], [0], [1], [0, 0, 1, 1], [], []>} : vector<8x32xf32>, vector<32x192xf32>, vector<8x192xf32> -> vector<8x192xf32>
    %4 = vector.extract_strided_slice %3 {offsets = [0, 0], sizes = [8, 64], strides = [1, 1]} : vector<8x192xf32> to vector<8x64xf32>
    %cst_4 = arith.constant 2.500000e-01 : f32
    %5 = vector.broadcast %cst_4 : f32 to vector<8x64xf32>
    %6 = arith.mulf %4, %5 : vector<8x64xf32>
    %7 = vector.extract_strided_slice %3 {offsets = [0, 64], sizes = [8, 64], strides = [1, 1]} : vector<8x192xf32> to vector<8x64xf32>
    %8 = vector.extract_strided_slice %3 {offsets = [0, 128], sizes = [8, 64], strides = [1, 1]} : vector<8x192xf32> to vector<8x64xf32>
    %9 = tpu.iota {dimensions = array<i32: 1>} : vector<8x8xi32>
    %10 = tpu.iota {dimensions = array<i32: 0>} : vector<8x8xi32>
    %11 = arith.subi %9, %10 : vector<8x8xi32>
    %12 = arith.sitofp %11 : vector<8x8xi32> to vector<8x8xf32>
    %13 = vector.extract_strided_slice %6 {offsets = [0, 0], sizes = [8, 16], strides = [1, 1]} : vector<8x64xf32> to vector<8x16xf32>
    %14 = vector.extract_strided_slice %7 {offsets = [0, 0], sizes = [8, 16], strides = [1, 1]} : vector<8x64xf32> to vector<8x16xf32>
    %15 = vector.extract_strided_slice %8 {offsets = [0, 0], sizes = [8, 16], strides = [1, 1]} : vector<8x64xf32> to vector<8x16xf32>
    %cst_5 = arith.constant dense<0.000000e+00> : vector<8x8xf32>
    %16 = tpu.matmul %13, %14, %cst_5 {dimension_numbers = #tpu.dot_dimension_numbers<[1], [1], [0], [0], [0, 0, 1, 0], [], []>} : vector<8x16xf32>, vector<8x16xf32>, vector<8x8xf32> -> vector<8x8xf32>
    %cst_6 = arith.constant 2.500000e-01 : f32
    %17 = vector.broadcast %cst_6 : f32 to vector<8x8xf32>
    %18 = arith.mulf %17, %12 : vector<8x8xf32>
    %19 = arith.addf %16, %18 : vector<8x8xf32>
    %cst_7 = arith.constant dense<0xFF800000> : vector<8xf32>
    %20 = vector.multi_reduction <maximumf>, %19, %cst_7 [1] : vector<8x8xf32> to vector<8xf32>
    %21 = vector.shape_cast %20 : vector<8xf32> to vector<8x1xf32>
    %22 = vector.broadcast %21 : vector<8x1xf32> to vector<8x8xf32>
    %23 = arith.subf %19, %22 : vector<8x8xf32>
    %24 = math.exp %23 : vector<8x8xf32>
    %cst_8 = arith.constant dense<0.000000e+00> : vector<8xf32>
    %25 = vector.multi_reduction <add>, %24, %cst_8 [1] : vector<8x8xf32> to vector<8xf32>
    %26 = vector.shape_cast %25 : vector<8xf32> to vector<8x1xf32>
    %27 = tpu.reciprocal %26 : vector<8x1xf32> -> vector<8x1xf32>
    %28 = vector.broadcast %27 : vector<8x1xf32> to vector<8x8xf32>
    %29 = arith.mulf %24, %28 : vector<8x8xf32>
    %cst_9 = arith.constant dense<0.000000e+00> : vector<8x16xf32>
    %30 = tpu.matmul %29, %15, %cst_9 {dimension_numbers = #tpu.dot_dimension_numbers<[1], [0], [0], [1], [0, 0, 1, 1], [], []>} : vector<8x8xf32>, vector<8x16xf32>, vector<8x16xf32> -> vector<8x16xf32>
    %31 = vector.extract_strided_slice %6 {offsets = [0, 16], sizes = [8, 16], strides = [1, 1]} : vector<8x64xf32> to vector<8x16xf32>
    %32 = vector.extract_strided_slice %7 {offsets = [0, 16], sizes = [8, 16], strides = [1, 1]} : vector<8x64xf32> to vector<8x16xf32>
    %33 = vector.extract_strided_slice %8 {offsets = [0, 16], sizes = [8, 16], strides = [1, 1]} : vector<8x64xf32> to vector<8x16xf32>
    %cst_10 = arith.constant dense<0.000000e+00> : vector<8x8xf32>
    %34 = tpu.matmul %31, %32, %cst_10 {dimension_numbers = #tpu.dot_dimension_numbers<[1], [1], [0], [0], [0, 0, 1, 0], [], []>} : vector<8x16xf32>, vector<8x16xf32>, vector<8x8xf32> -> vector<8x8xf32>
    %cst_11 = arith.constant 6.250000e-02 : f32
    %35 = vector.broadcast %cst_11 : f32 to vector<8x8xf32>
    %36 = arith.mulf %35, %12 : vector<8x8xf32>
    %37 = arith.addf %34, %36 : vector<8x8xf32>
    %cst_12 = arith.constant dense<0xFF800000> : vector<8xf32>
    %38 = vector.multi_reduction <maximumf>, %37, %cst_12 [1] : vector<8x8xf32> to vector<8xf32>
    %39 = vector.shape_cast %38 : vector<8xf32> to vector<8x1xf32>
    %40 = vector.broadcast %39 : vector<8x1xf32> to vector<8x8xf32>
    %41 = arith.subf %37, %40 : vector<8x8xf32>
    %42 = math.exp %41 : vector<8x8xf32>
    %cst_13 = arith.constant dense<0.000000e+00> : vector<8xf32>
    %43 = vector.multi_reduction <add>, %42, %cst_13 [1] : vector<8x8xf32> to vector<8xf32>
    %44 = vector.shape_cast %43 : vector<8xf32> to vector<8x1xf32>
    %45 = tpu.reciprocal %44 : vector<8x1xf32> -> vector<8x1xf32>
    %46 = vector.broadcast %45 : vector<8x1xf32> to vector<8x8xf32>
    %47 = arith.mulf %42, %46 : vector<8x8xf32>
    %cst_14 = arith.constant dense<0.000000e+00> : vector<8x16xf32>
    %48 = tpu.matmul %47, %33, %cst_14 {dimension_numbers = #tpu.dot_dimension_numbers<[1], [0], [0], [1], [0, 0, 1, 1], [], []>} : vector<8x8xf32>, vector<8x16xf32>, vector<8x16xf32> -> vector<8x16xf32>
    %49 = vector.extract_strided_slice %6 {offsets = [0, 32], sizes = [8, 16], strides = [1, 1]} : vector<8x64xf32> to vector<8x16xf32>
    %50 = vector.extract_strided_slice %7 {offsets = [0, 32], sizes = [8, 16], strides = [1, 1]} : vector<8x64xf32> to vector<8x16xf32>
    %51 = vector.extract_strided_slice %8 {offsets = [0, 32], sizes = [8, 16], strides = [1, 1]} : vector<8x64xf32> to vector<8x16xf32>
    %cst_15 = arith.constant dense<0.000000e+00> : vector<8x8xf32>
    %52 = tpu.matmul %49, %50, %cst_15 {dimension_numbers = #tpu.dot_dimension_numbers<[1], [1], [0], [0], [0, 0, 1, 0], [], []>} : vector<8x16xf32>, vector<8x16xf32>, vector<8x8xf32> -> vector<8x8xf32>
    %cst_16 = arith.constant 1.562500e-02 : f32
    %53 = vector.broadcast %cst_16 : f32 to vector<8x8xf32>
    %54 = arith.mulf %53, %12 : vector<8x8xf32>
    %55 = arith.addf %52, %54 : vector<8x8xf32>
    %cst_17 = arith.constant dense<0xFF800000> : vector<8xf32>
    %56 = vector.multi_reduction <maximumf>, %55, %cst_17 [1] : vector<8x8xf32> to vector<8xf32>
    %57 = vector.shape_cast %56 : vector<8xf32> to vector<8x1xf32>
    %58 = vector.broadcast %57 : vector<8x1xf32> to vector<8x8xf32>
    %59 = arith.subf %55, %58 : vector<8x8xf32>
    %60 = math.exp %59 : vector<8x8xf32>
    %cst_18 = arith.constant dense<0.000000e+00> : vector<8xf32>
    %61 = vector.multi_reduction <add>, %60, %cst_18 [1] : vector<8x8xf32> to vector<8xf32>
    %62 = vector.shape_cast %61 : vector<8xf32> to vector<8x1xf32>
    %63 = tpu.reciprocal %62 : vector<8x1xf32> -> vector<8x1xf32>
    %64 = vector.broadcast %63 : vector<8x1xf32> to vector<8x8xf32>
    %65 = arith.mulf %60, %64 : vector<8x8xf32>
    %cst_19 = arith.constant dense<0.000000e+00> : vector<8x16xf32>
    %66 = tpu.matmul %65, %51, %cst_19 {dimension_numbers = #tpu.dot_dimension_numbers<[1], [0], [0], [1], [0, 0, 1, 1], [], []>} : vector<8x8xf32>, vector<8x16xf32>, vector<8x16xf32> -> vector<8x16xf32>
    %67 = vector.extract_strided_slice %6 {offsets = [0, 48], sizes = [8, 16], strides = [1, 1]} : vector<8x64xf32> to vector<8x16xf32>
    %68 = vector.extract_strided_slice %7 {offsets = [0, 48], sizes = [8, 16], strides = [1, 1]} : vector<8x64xf32> to vector<8x16xf32>
    %69 = vector.extract_strided_slice %8 {offsets = [0, 48], sizes = [8, 16], strides = [1, 1]} : vector<8x64xf32> to vector<8x16xf32>
    %cst_20 = arith.constant dense<0.000000e+00> : vector<8x8xf32>
    %70 = tpu.matmul %67, %68, %cst_20 {dimension_numbers = #tpu.dot_dimension_numbers<[1], [1], [0], [0], [0, 0, 1, 0], [], []>} : vector<8x16xf32>, vector<8x16xf32>, vector<8x8xf32> -> vector<8x8xf32>
    %cst_21 = arith.constant 3.906250e-03 : f32
    %71 = vector.broadcast %cst_21 : f32 to vector<8x8xf32>
    %72 = arith.mulf %71, %12 : vector<8x8xf32>
    %73 = arith.addf %70, %72 : vector<8x8xf32>
    %cst_22 = arith.constant dense<0xFF800000> : vector<8xf32>
    %74 = vector.multi_reduction <maximumf>, %73, %cst_22 [1] : vector<8x8xf32> to vector<8xf32>
    %75 = vector.shape_cast %74 : vector<8xf32> to vector<8x1xf32>
    %76 = vector.broadcast %75 : vector<8x1xf32> to vector<8x8xf32>
    %77 = arith.subf %73, %76 : vector<8x8xf32>
    %78 = math.exp %77 : vector<8x8xf32>
    %cst_23 = arith.constant dense<0.000000e+00> : vector<8xf32>
    %79 = vector.multi_reduction <add>, %78, %cst_23 [1] : vector<8x8xf32> to vector<8xf32>
    %80 = vector.shape_cast %79 : vector<8xf32> to vector<8x1xf32>
    %81 = tpu.reciprocal %80 : vector<8x1xf32> -> vector<8x1xf32>
    %82 = vector.broadcast %81 : vector<8x1xf32> to vector<8x8xf32>
    %83 = arith.mulf %78, %82 : vector<8x8xf32>
    %cst_24 = arith.constant dense<0.000000e+00> : vector<8x16xf32>
    %84 = tpu.matmul %83, %69, %cst_24 {dimension_numbers = #tpu.dot_dimension_numbers<[1], [0], [0], [1], [0, 0, 1, 1], [], []>} : vector<8x8xf32>, vector<8x16xf32>, vector<8x16xf32> -> vector<8x16xf32>
    %85 = tpu.concatenate %29, %47, %65, %83 in 1 : vector<8x8xf32>, vector<8x8xf32>, vector<8x8xf32>, vector<8x8xf32> -> vector<8x32xf32>
    %c0_25 = arith.constant 0 : index
    %c0_26 = arith.constant 0 : index
    %c0_27 = arith.constant 0 : index
    %86 = vector.load %arg6[%c0_25, %c0_26, %c0_27] : memref<1x8x32xf32, #tpu.memory_space<vmem>>, vector<1x8x32xf32>
    %87 = vector.shape_cast %86 : vector<1x8x32xf32> to vector<8x32xf32>
    %88 = vector.shape_cast %85 : vector<8x32xf32> to vector<1x8x32xf32>
    tpu.vector_store %arg6[%c0_25, %c0_26, %c0_27], %88 {strides = array<i32>} : memref<1x8x32xf32, #tpu.memory_space<vmem>>, vector<1x8x32xf32>,
    %89 = tpu.concatenate %30, %48, %66, %84 in 1 : vector<8x16xf32>, vector<8x16xf32>, vector<8x16xf32>, vector<8x16xf32> -> vector<8x64xf32>
    %c0_28 = arith.constant 0 : index
    %c0_29 = arith.constant 0 : index
    %90 = vector.load %arg3[%c0_28, %c0_29] : memref<64x32xf32, #tpu.memory_space<vmem>>, vector<64x32xf32>
    %cst_30 = arith.constant dense<0.000000e+00> : vector<8x32xf32>
    %91 = tpu.matmul %89, %90, %cst_30 {dimension_numbers = #tpu.dot_dimension_numbers<[1], [0], [0], [1], [0, 0, 1, 1], [], []>} : vector<8x64xf32>, vector<64x32xf32>, vector<8x32xf32> -> vector<8x32xf32>
    %c0_31 = arith.constant 0 : index
    %c0_32 = arith.constant 0 : index
    %92 = vector.load %arg4[%c0_31, %c0_32] : memref<1x32xf32, #tpu.memory_space<vmem>>, vector<1x32xf32>
    %93 = vector.broadcast %92 : vector<1x32xf32> to vector<8x32xf32>
    %94 = arith.addf %91, %93 : vector<8x32xf32>
    %c0_33 = arith.constant 0 : index
    %c0_34 = arith.constant 0 : index
    %c0_35 = arith.constant 0 : index
    %95 = vector.load %arg5[%c0_33, %c0_34, %c0_35] : memref<1x8x32xf32, #tpu.memory_space<vmem>>, vector<1x8x32xf32>
    %96 = vector.shape_cast %95 : vector<1x8x32xf32> to vector<8x32xf32>
    %97 = vector.shape_cast %94 : vector<8x32xf32> to vector<1x8x32xf32>
    tpu.vector_store %arg5[%c0_33, %c0_34, %c0_35], %97 {strides = array<i32>} : memref<1x8x32xf32, #tpu.memory_space<vmem>>, vector<1x8x32xf32>,
    return
  }
  func.func @transform_0(%arg0: i32) -> (i32, i32, i32) {
    %c0_i32 = arith.constant 0 : i32
    %c0_i32_0 = arith.constant 0 : i32
    %c0_i32_1 = arith.constant 0 : i32
    return %arg0, %c0_i32, %c0_i32_0 : i32, i32, i32
  }
  func.func @transform_1(%arg0: i32) -> (i32, i32) {
    %c0_i32 = arith.constant 0 : i32
    %c0_i32_0 = arith.constant 0 : i32
    %c0_i32_1 = arith.constant 0 : i32
    return %c0_i32, %c0_i32_0 : i32, i32
  }
  func.func @transform_2(%arg0: i32) -> (i32, i32) {
    %c0_i32 = arith.constant 0 : i32
    %c0_i32_0 = arith.constant 0 : i32
    %c0_i32_1 = arith.constant 0 : i32
    return %c0_i32, %c0_i32_0 : i32, i32
  }
  func.func @transform_3(%arg0: i32) -> (i32, i32) {
    %c0_i32 = arith.constant 0 : i32
    %c0_i32_0 = arith.constant 0 : i32
    %c0_i32_1 = arith.constant 0 : i32
    return %c0_i32, %c0_i32_0 : i32, i32
  }
  func.func @transform_4(%arg0: i32) -> (i32, i32, i32) {
    %c0_i32 = arith.constant 0 : i32
    %c0_i32_0 = arith.constant 0 : i32
    %c0_i32_1 = arith.constant 0 : i32
    return %arg0, %c0_i32, %c0_i32_0 : i32, i32, i32
  }
  func.func @transform_5(%arg0: i32) -> (i32, i32, i32) {
    %c0_i32 = arith.constant 0 : i32
    %c0_i32_0 = arith.constant 0 : i32
    %c0_i32_1 = arith.constant 0 : i32
    return %arg0, %c0_i32, %c0_i32_0 : i32, i32, i32
  }
}

</mosaic_0001>

<bundles_post_ra>
// kernel: tpu_custom_call.1
= control target key start
LH: loop header
LB: loop body
LE: loop exit
PB: predicated region body
PF: predicated region fallthrough
CT: control target
= control target key end

     0   :  { %11 = vsyncpa [#allocation3], 0  ;;  %s1804_s0 = inlined_call_operand.vmem [shape: f32[2,8,32], index: 0, kind: input, shape index: {}]   ;;  %s1805_s1 = inlined_call_operand.vmem [shape: f32[32,192], index: 1, kind: input, shape index: {}]   ;;  %s1806_s2 = inlined_call_operand.vmem [shape: f32[64,32], index: 2, kind: input, shape index: {}]   ;;  %s1807_s3 = inlined_call_operand.vmem [shape: f32[1,32], index: 3, kind: input, shape index: {}]   ;;  %s1808_s4 = inlined_call_operand.hbm [shape: f32[2,8,32], index: 4, kind: output, shape index: {0}]   ;;  %s1809_s5 = inlined_call_operand.hbm [shape: f32[2,8,32], index: 5, kind: output, shape index: {1}]  }
   0x1   :  { %13 = vsyncpa [#allocation3 + $0x1], 0 }
   0x2   :  { %14 = vsyncpa [#allocation5], 0 }
   0x3   :  { %16 = vsyncpa [#allocation5 + $0x1], 0  ;;  %s1547_s18 = smov 0   ;;  %s1549_s19 = smov 0  }
   0x4   :  { %s1551_s20 = smov 0   ;;  %s1553_s21 = smov 0  }
   0x5 LB: > { %s1568_s22 = sadd.s32 4294967295, %s1502_s21   ;;  %s1229_s23 = sadd.s32 4294967294, %s1502_s21   ;;  %s1502_s21 = sphi %s1553_s21, %s1815_s21   ;;  %s1498_s20 = sphi %s1551_s20, %s1814_s20   ;;  %s1494_s19 = sphi %s1549_s19, %s1813_s19   ;;  %s1490_s18 = sphi %s1547_s18, %s1812_s18  }
   0x6   : > { %s1572_s24 = sadd.s32 1, %s1502_s21   ;;  %s118_s25 = sadd.s32 1, %s1498_s20 }
   0x7   : > { %s115_s26 = ssub.s32 %s1502_s21, %s1572_s24  ;;  %p128_p0 = scmp.ne.s32.totalorder %s1498_s20, %s1494_s19 }
   0x8   : > { %p116_p1 = scmp.eq.s32.totalorder %s115_s26, 0  ;;  %p129_p2 = scmp.eq.s32.totalorder %s1568_s22, 1 }
   0x9   : > { %p134_p3 = scmp.ne.s32.totalorder %s1494_s19, %s1490_s18  ;;  %p135_p4 = scmp.eq.s32.totalorder %s1229_s23, 1 }
   0xa   : > { %s1583_s27 = scalar_select %p116_p1, %s1498_s20, %s118_s25  }
   0xb   : > { %p1585_p5 = por %p129_p2, %p128_p0  ;;  %p1589_p6 = por %p135_p4, %p134_p3 }
   0xc   : > { %p1232_p7 = scmp.ge.s32.totalorder %s1502_s21, 1  ;;  %p195_p8 = scmp.lt.s32.totalorder %s1502_s21, 3 }
   0xe   : > { %p196_p9 = pnand %p1232_p7, %p195_p8 }
   0xf   : > { %p227_p10 = scmp.lt.s32.totalorder (!%p196_p9), %s1568_s22, 1  ;;  %s1506_s10 = smov (!%p196_p9), 64  }
  0x10   : > { %199 = sbr.rel (%p196_p9) target bundleno = 1422 (0x58e), region = 36  ;;  %s1507_s11 = smov (!%p196_p9), 112  }
  0x11   : > { %s1508_s12 = smov (!%p196_p9), 48   ;;  %s1509_s13 = smov (!%p196_p9), 32  }
  0x12   : > { %s1510_s14 = smov (!%p196_p9), 96   ;;  %s1512_s16 = smov (!%p196_p9), 80  }
  0x13   : > { %s1514_s23 = smov (!%p196_p9), 24   ;;  %s1727_s30 = sand.u32 (!%p196_p9), 1, %s1494_s19  }
  0x14   : > { %s1253_s6 = sshll.u32 (!%p196_p9), %s1568_s22, 7 }
  0x15   : > { %v239_v0 = vld [vmem:[%s1805_s1 + $0x38] sm:$0xff]  ;;  %v238_v1 = vld [vmem:[%s1805_s1 + $0x30] sm:$0xff]  ;;  %v237_v2 = vld [vmem:[%s1805_s1 + $0x28] sm:$0xff]  ;;  %v1504_v4 = vmov 0.0   ;;  %s228_s15 = scalar_select %p227_p10, %s1568_s22, 1  ;;  %vm240_vm0 = vcmask 261120   ;;  %v316_v20 = vlaneseq }
  0x16   : > { %268 = vmatprep.subr.mxu1 %v239_v0  ;;  %v236_v3 = vld [vmem:[%s1805_s1 + $0x20] sm:$0xff]  ;;  %308 = vmatprep.mubr.f32.mxu1 %v1504_v4  ;;  %v235_v5 = vld [vmem:[%s1805_s1 + $0x18] sm:$0xff]  ;;  %v234_v6 = vld [vmem:[%s1805_s1 + $0x10] sm:$0xff]  ;;  %vm1505_vm1 = vmmov 0   ;;  %vm326_vm2 = vcmask 130048   ;;  %vm402_vm3 = vcmask 64512  }
  0x17   : > { %269 = vmatpush1.msra.mxu1 %v238_v1  ;;  %1292 = vmatprep.subr.mxu0 %v1504_v4  ;;  %v233_v7 = vld [vmem:[%s1805_s1 + $0x8] sm:$0xff]  ;;  %s1235_s26 = sshll.u32 %s228_s15, 3  ;;  %v232_v8 = vld [vmem:[%s1805_s1] sm:$0xff]  ;;  %s1511_s15 = smov 16   ;;  %v317_v21 = vand.u32 127, %v316_v20  ;;  %v319_v22 = vshrl.u32 %v316_v20, 7 }
  0x18   : > { %270 = vmatprep.subr.mxu1 %v237_v2  ;;  %s230_s9 = scalar_lea.vmem %s1804_s0, %s1235_s26  ;;  %1294 = vmatprep.mubr.msk.f32.mxu0 %vm1505_vm1, %v1504_v4  ;;  %v1022_v20 = vld [vmem:[%s1806_s2 + $0x30] sm:$0xff]  ;;  %vm1014_vm4 = vcmask 392192   ;;  %vm1031_vm5 = vcmask 523264   ;;  %vm997_vm6 = vcmask 195584  }
  0x19   : > { %271 = vmatpush1.msra.mxu1 %v236_v3  ;;  %v231_v9 = vld [vmem:[%s230_s9] sm:$0xff]  ;;  %v320_v23 = vsub.s32 %v317_v21, %v319_v22  ;;  %v1021_v22 = vld [vmem:[%s1806_s2 + $0x28] sm:$0xff]  ;;  %s1136_s9 = scalar_lea.hbm %s1809_s5, %s1253_s6 }
  0x1a   : > { %272 = vmatprep.subr.mxu1 %v235_v5 }
  0x1b   : > { %273 = vmatpush1.msra.mxu1 %v234_v6  ;;  %v321_v24 = vcvt.s32.f32 %v320_v23 }
  0x1c   : > { %274 = vmatprep.subr.mxu1 %v233_v7 }
  0x1d   : > { %275 = vmatpush1.msra.mxu1 %v232_v8  ;;  %v322_v25 = vmul.f32 0.25, %v321_v24  ;;  %v487_v28 = vmul.f32 0.0625, %v321_v24  ;;  %v654_v33 = vmul.f32 0.015625, %v321_v24  ;;  %v820_v38 = vmul.f32 0.00390625, %v321_v24  ;;  %v1020_v24 = vld [vmem:[%s1806_s2 + $0x20] sm:$0xff] }
  0x1e   : > { %1236 = vmatmul.mubr.msk.f32.vlgmr.msra.gmra.mxu1 %vm240_vm0, %v231_v9  ;;  %1282 = vmatprep.subr.mxu1 %v1504_v4 }
  0x1f   : > { %1284 = vmatprep.mubr.msk.f32.mxu1 %vm1505_vm1, %v1504_v4 }
  0xde   : > { %v310_v10 = vpop.f32.mrf.mxu1 }
  0xdf   : > { %324 = vrot.lane.b32.xlu0 %v310_v10, %s1506_s10  ;;  %v315_v11 = vmul.f32 0.25, %v310_v10 }
  0xe0   : > { %v1640_v14 = vpop.f32.mrf.mxu1 }
  0xe1   : > { %488 = vrot.lane.b32.xlu1 %v315_v11, %s1507_s11 }
  0xe3   : > { %490 = vrot.lane.b32.xlu0 %v310_v10, %s1508_s12 }
  0xe5   : > { %657 = vrot.lane.b32.xlu1 %v310_v10, %s1509_s13 }
  0xe7   : > { %655 = vrot.lane.b32.xlu0 %v315_v11, %s1510_s14 }
  0xe9   : > { %823 = vrot.lane.b32.xlu1 %v310_v10, %s1511_s15 }
  0xeb   : > { %821 = vrot.lane.b32.xlu0 %v315_v11, %s1512_s16 }
 0x151   : > { %v325_v12 = vpop.permute.xlu0 %324 }
 0x152   : > { %1283 = vmatpush3.xpose.msk.msra.mxu1 %vm326_vm2, %v325_v12 }
 0x153   : > { %v489_v13 = vpop.permute.xlu1 %488  ;;  %1287 = vmatprep.subr.mxu1 %v1504_v4 }
 0x155   : > { %v491_v15 = vpop.permute.xlu0 %490  ;;  %1285 = vmatmul.mubr.msk.f32.vlgmr.msra.gmra.mxu1 %vm326_vm2, %v315_v11 }
 0x156   : > { %1288 = vmatpush3.msra.mxu1 %v1640_v14  ;;  %1293 = vmatpush3.xpose.msk.msra.mxu0 %vm326_vm2, %v491_v15 }
 0x157   : > { %v658_v16 = vpop.permute.xlu1 %657  ;;  %1302 = vmatprep.subr.mxu0 %v1504_v4  ;;  %1289 = vmatprep.mubr.msk.f32.mxu1 %vm1505_vm1, %v1504_v4 }
 0x158   : > { %1297 = vmatprep.subr.mxu1 %v1504_v4 }
 0x159   : > { %1295 = vmatmul.mubr.msk.f32.vlgmr.msra.gmra.mxu0 %vm326_vm2, %v489_v13  ;;  %v656_v17 = vpop.permute.xlu0 %655 }
 0x15a   : > { %1303 = vmatpush3.xpose.msk.msra.mxu0 %vm326_vm2, %v658_v16  ;;  %1304 = vmatprep.mubr.msk.f32.mxu0 %vm1505_vm1, %v1504_v4 }
 0x15b   : > { %1312 = vmatprep.subr.mxu0 %v1504_v4  ;;  %v824_v18 = vpop.permute.xlu1 %823 }
 0x15d   : > { %1305 = vmatmul.mubr.msk.f32.vlgmr.msra.gmra.mxu0 %vm326_vm2, %v656_v17  ;;  %v822_v19 = vpop.permute.xlu0 %821 }
 0x15e   : > { %1313 = vmatpush3.xpose.msk.msra.mxu0 %vm326_vm2, %v824_v18  ;;  %1314 = vmatprep.mubr.msk.f32.mxu0 %vm1505_vm1, %v1504_v4 }
 0x15f   : > { %1322 = vmatprep.subr.mxu0 %v1504_v4 }
 0x161   : > { %1315 = vmatmul.mubr.msk.f32.vlgmr.msra.gmra.mxu0 %vm326_vm2, %v822_v19  ;;  %v1023_v19 = vld [vmem:[%s1806_s2 + $0x38] sm:$0xff] }
 0x162   : > { %1338 = vmatprep.mubr.msk.f32.mxu0 %vm1505_vm1, %v1504_v4  ;;  %1323 = vmatpush3.msra.mxu0 %v1023_v19 }
 0x163   : > { %1324 = vmatprep.subr.mxu0 %v1504_v4 }
 0x164   : > { %1325 = vmatpush3.msra.mxu0 %v1022_v20 }
 0x165   : > { %1326 = vmatprep.subr.mxu0 %v1504_v4 }
 0x166   : > { %1327 = vmatpush3.msra.mxu0 %v1021_v22 }
 0x167   : > { %1328 = vmatprep.subr.mxu0 %v1504_v4 }
 0x168   : > { %1329 = vmatpush3.msra.mxu0 %v1020_v24 }
 0x169   : > { %1330 = vmatprep.subr.mxu0 %v1504_v4 }
 0x215   : > { %v398_v26 = vpop.f32.mrf.mxu1 }
 0x216   : > { %v399_v27 = vadd.f32 %v398_v26, %v322_v25  ;;  %v1019_v26 = vld [vmem:[%s1806_s2 + $0x18] sm:$0xff] }
 0x217   : > { %v1286_v29 = vpop.f32.mrf.mxu1  ;;  %1331 = vmatpush3.msra.mxu0 %v1019_v26 }
 0x218   : > { %v403_v30 = vsel %vm402_vm3, %v399_v27, -inf  ;;  %1332 = vmatprep.subr.mxu0 %v1504_v4  ;;  %v1017_v29 = vld [vmem:[%s1806_s2 + $0x8] sm:$0xff] }
 0x219   : > { %v562_v31 = vpop.f32.mrf.mxu0  ;;  %404 = vmax.xlane.f32.xlu1 %v403_v30  ;;  %v1016_v30 = vld [vmem:[%s1806_s2] sm:$0xff] }
 0x21a   : > { %v563_v32 = vadd.f32 %v562_v31, %v487_v28  ;;  %v1018_v28 = vld [vmem:[%s1806_s2 + $0x10] sm:$0xff] }
 0x21b   : > { %v1296_v34 = vpop.f32.mrf.mxu0  ;;  %1333 = vmatpush3.msra.mxu0 %v1018_v28 }
 0x21c   : > { %v566_v35 = vsel %vm402_vm3, %v563_v32, -inf  ;;  %1334 = vmatprep.subr.mxu0 %v1504_v4 }
 0x21d   : > { %567 = vmax.xlane.f32.xlu0 %v566_v35  ;;  %v729_v36 = vpop.f32.mrf.mxu0  ;;  %1335 = vmatpush3.msra.mxu0 %v1017_v29 }
 0x21e   : > { %v730_v37 = vadd.f32 %v729_v36, %v654_v33  ;;  %1336 = vmatprep.subr.mxu0 %v1504_v4 }
 0x21f   : > { %v1306_v39 = vpop.f32.mrf.mxu0  ;;  %1337 = vmatpush3.msra.mxu0 %v1016_v30 }
 0x220   : > { %v733_v40 = vsel %vm402_vm3, %v730_v37, -inf }
 0x221   : > { %734 = vmax.xlane.f32.xlu0 %v733_v40  ;;  %v895_v41 = vpop.f32.mrf.mxu0 }
 0x222   : > { %v896_v42 = vadd.f32 %v895_v41, %v820_v38 }
 0x223   : > { %v1316_v43 = vpop.f32.mrf.mxu0 }
 0x224   : > { %v899_v44 = vsel %vm402_vm3, %v896_v42, -inf }
 0x225   : > { %900 = vmax.xlane.f32.xlu1 %v899_v44 }
 0x2a2   : > { %v405_v45 = vpop.xlane.xlu1 %404 }
 0x2a3   : > { %v406_v46 = vsub.f32 %v399_v27, %v405_v45 }
 0x2a5   : > { %v407_v47 = vmul.f32 1.442695, %v406_v46 }
 0x2a6   : > { %v568_v48 = vpop.xlane.xlu0 %567 }
 0x2a7   : > { %1396 = vpow2.f32 %v407_v47  ;;  %v569_v49 = vsub.f32 %v563_v32, %v568_v48 }
 0x2a9   : > { %v570_v50 = vmul.f32 1.442695, %v569_v49 }
 0x2aa   : > { %v735_v51 = vpop.xlane.xlu0 %734 }
 0x2ab   : > { %1398 = vpow2.f32 %v570_v50  ;;  %v736_v52 = vsub.f32 %v730_v37, %v735_v51 }
 0x2ad   : > { %v737_v53 = vmul.f32 1.442695, %v736_v52 }
 0x2ae   : > { %v901_v60 = vpop.xlane.xlu1 %900 }
 0x2af   : > { %1400 = vpow2.f32 %v737_v53  ;;  %v902_v61 = vsub.f32 %v896_v42, %v901_v60 }
 0x2b1   : > { %v903_v62 = vmul.f32 1.442695, %v902_v61 }
 0x2b3   : > { %1402 = vpow2.f32 %v903_v62 }
 0x2b4   : > { %v1397_v54 = vpop.eup %1396 }
 0x2b5   : > { %v409_v55 = vsel %vm402_vm3, %v1397_v54, 0.0 }
 0x2b6   : > { %410 = vadd.xlane.f32.xlu0 %v409_v55 }
 0x2b8   : > { %v1399_v56 = vpop.eup %1398 }
 0x2b9   : > { %v572_v57 = vsel %vm402_vm3, %v1399_v56, 0.0 }
 0x2ba   : > { %573 = vadd.xlane.f32.xlu1 %v572_v57 }
 0x2bc   : > { %v1401_v58 = vpop.eup %1400 }
 0x2bd   : > { %v739_v59 = vsel %vm402_vm3, %v1401_v58, 0.0 }
 0x2be   : > { %740 = vadd.xlane.f32.xlu0 %v739_v59 }
 0x2c0   : > { %v1403_v63 = vpop.eup %1402 }
 0x2c1   : > { %v905_v0 = vsel %vm402_vm3, %v1403_v63, 0.0 }
 0x2cb   : > { %744 = vrot.lane.b32.xlu1 %v1640_v14, %s1510_s14 }
 0x2d4   : > { %578 = vrot.lane.b32.xlu0 %v1640_v14, %s1507_s11  ;;  %s1112_s11 = scalar_lea.sflag [#allocation5], %s1727_s30 }
 0x2ef   : > { %906 = vadd.xlane.f32.xlu1 %v905_v0 }
 0x300   : > { %910 = vrot.lane.b32.xlu1 %v1640_v14, %s1512_s16  ;;  %s1513_s16 = smov 8  }
 0x33f   : > { %v411_v1 = vpop.xlane.xlu0 %410 }
 0x340   : > { %1404 = vrcp.f32 %v411_v1 }
 0x343   : > { %v574_v2 = vpop.xlane.xlu1 %573 }
 0x344   : > { %1406 = vrcp.f32 %v574_v2 }
 0x347   : > { %v741_v3 = vpop.xlane.xlu0 %740  ;;  %v745_v10 = vpop.permute.xlu1 %744 }
 0x348   : > { %1408 = vrcp.f32 %v741_v3 }
 0x34b   : > { %v579_v7 = vpop.permute.xlu0 %578 }
 0x34d   : > { %v1405_v5 = vpop.eup %1404 }
 0x34e   : > { %v1676_v6 = vmul.f32 %v1405_v5, %v1397_v54 }
 0x350   : > { %1290 = vmatmul.mubr.msk.f32.vlgmr.msra.gmra.mxu1 %vm402_vm3, %v1676_v6 }
 0x351   : > { %v1407_v8 = vpop.eup %1406  ;;  %1298 = vmatpush3.msra.mxu1 %v579_v7  ;;  %1299 = vmatprep.mubr.msk.f32.mxu1 %vm1505_vm1, %v1504_v4 }
 0x352   : > { %1307 = vmatprep.subr.mxu1 %v1504_v4  ;;  %v576_v9 = vmul.f32 %v1407_v8, %v1399_v56 }
 0x354   : > { %1300 = vmatmul.mubr.msk.f32.vlgmr.msra.gmra.mxu1 %vm402_vm3, %v576_v9 }
 0x355   : > { %v1409_v11 = vpop.eup %1408  ;;  %1308 = vmatpush3.msra.mxu1 %v745_v10  ;;  %1309 = vmatprep.mubr.msk.f32.mxu1 %vm1505_vm1, %v1504_v4 }
 0x356   : > { %v743_v12 = vmul.f32 %v1409_v11, %v1401_v58  ;;  %1317 = vmatprep.subr.mxu1 %v1504_v4 }
 0x358   : > { %1310 = vmatmul.mubr.msk.f32.vlgmr.msra.gmra.mxu1 %vm402_vm3, %v743_v12 }
 0x359   : > { %1319 = vmatprep.mubr.msk.f32.mxu1 %vm1505_vm1, %v1504_v4 }
 0x378   : > { %v907_v13 = vpop.xlane.xlu1 %906 }
 0x379   : > { %1410 = vrcp.f32 %v907_v13 }
 0x37c   : > { %v911_v14 = vpop.permute.xlu1 %910 }
 0x37d   : > { %1318 = vmatpush3.msra.mxu1 %v911_v14 }
 0x386   : > { %v1411_v15 = vpop.eup %1410 }
 0x387   : > { %v909_v16 = vmul.f32 %v1411_v15, %v1403_v63 }
 0x389   : > { %1320 = vmatmul.mubr.msk.f32.vlgmr.msra.gmra.mxu1 %vm402_vm3, %v909_v16 }
 0x410   : > { %v483_v17 = vpop.f32.mrf.mxu1 }
 0x412   : > { %v1291_v18 = vpop.f32.mrf.mxu1 }
 0x414   : > { %v650_v21 = vpop.f32.mrf.mxu1 }
 0x415   : > { %1001 = vrot.lane.b32.xlu0 %v650_v21, %s1511_s15 }
 0x416   : > { %v1301_v23 = vpop.f32.mrf.mxu1 }
 0x418   : > { %v816_v25 = vpop.f32.mrf.mxu1 }
 0x419   : > { %1005 = vrot.lane.b32.xlu1 %v816_v25, %s1509_s13 }
 0x41a   : > { %v1311_v27 = vpop.f32.mrf.mxu1 }
 0x41d   : > { %986 = vrot.lane.b32.xlu1 %v576_v9, %s1513_s16  ;;  %s1515_s16 = smov [#allocation4]  }
 0x41e   : > { %s1416_s13 = sshll.u32 %s1515_s16, 4  ;;  %s1417_s13 = int_to_ptr.vmem [resolvable:$false] %s1416_s13 }
 0x41f   : > { %s1418_s17 = scalar_lea.vmem %s1417_s13, 256 }
 0x421   : > { %992 = vrot.lane.b32.xlu1 %v909_v16, %s1514_s23 }
 0x449   : > { %v982_v31 = vpop.f32.mrf.mxu1 }
 0x44a   : > { %1009 = vrot.lane.b32.xlu0 %v982_v31, %s1508_s12  ;;  %s1233_s12 = sshll.u32 %s1727_s30, 3 }
 0x44b   : > { %v1321_v32 = vpop.f32.mrf.mxu1 }
 0x44e   : > { %989 = vrot.lane.b32.xlu0 %v743_v12, %s1511_s15  ;;  %s226_s15 = scalar_lea.vmem [#allocation4], %s1233_s12 }
 0x44f   : > { %s1138_s10 = sshll.u32 %s226_s15, 4  ;;  %s1139_s10 = int_to_ptr.vmem [resolvable:$true] %s1138_s10 }
 0x450   : > { %s1412_s14 = scalar_lea.vmem %s1139_s10, 128  ;;  %p1419_p0 = scmp.lt.s32.totalorder %s1139_s10, %s1417_s13 }
 0x451   : > { %p1413_p11 = scmp.ne.s32.totalorder %s1139_s10, %s1412_s14  ;;  %p1420_p1 = scmp.lt.s32.totalorder %s1418_s17, %s1412_s14 }
 0x453   : > { %p1414_p12 = pnand %p1413_p11, %p1585_p5  ;;  %p1421_p2 = por %p1420_p1, %p1419_p0 }
 0x455   : > { %p1415_p13 = pneg %p1414_p12 }
 0x457   : > { %p1422_p3 = pnand %p1421_p2, %p1415_p13 }
 0x487   : > { %v1002_v34 = vpop.permute.xlu0 %1001 }
 0x488   : > { %v1012_v4 = vsel %vm326_vm2, %v483_v17, %v1002_v34 }
 0x48b   : > { %v1006_v33 = vpop.permute.xlu1 %1005 }
 0x48c   : > { %v1013_v36 = vsel %vm240_vm0, %v1012_v4, %v1006_v33 }
 0x48f   : > { %v987_v35 = vpop.permute.xlu1 %986 }
 0x490   : > { %v995_v39 = vsel %vm402_vm3, %v1676_v6, %v987_v35 }
 0x493   : > { %v993_v41 = vpop.permute.xlu1 %992 }
 0x4bc   : > { %v1010_v37 = vpop.permute.xlu0 %1009 }
 0x4bd   : > { %v1015_v38 = vsel %vm1014_vm4, %v1013_v36, %v1010_v37 }
 0x4be   : > { %1339 = vmatmul.mubr.msk.f32.vlgmr.msra.gmra.mxu0 %vm1031_vm5, %v1015_v38 }
 0x4c0   : > { %v990_v40 = vpop.permute.xlu0 %989 }
 0x4c1   : > { %v996_v42 = vsel %vm326_vm2, %v995_v39, %v990_v40 }
 0x4c2   : > { %v998_v43 = vsel %vm997_vm6, %v996_v42, %v993_v41 }
 0x4c3   : > { %999 = vst.msk [vmem:[%s226_s15] sm:$0xff] %vm240_vm0, %v998_v43 }
 0x4c4   : > { %1425 = shalt.err (!%p1422_p3)
}
 0x4c5   : > { %s1426_s23 = scalar_lea.hbm %s1136_s9, 128  ;;  %s1430_s15 = scalar_lea.hbm %s1809_s5, 256 }
 0x4c6   : > { %p1427_p4 = scmp.ne.s32.totalorder %s1136_s9, %s1426_s23  ;;  %p1431_p9 = scmp.lt.s32.totalorder %s1136_s9, %s1809_s5 }
 0x4c7   : > { %p1432_p10 = scmp.lt.s32.totalorder %s1430_s15, %s1426_s23 }
 0x4c8   : > { %p1428_p7 = pnand %p1427_p4, %p1585_p5 }
 0x4c9   : > { %p1433_p11 = por %p1432_p10, %p1431_p9 }
 0x4ca   : > { %p1429_p8 = pneg %p1428_p7 }
 0x4cc   : > { %p1434_p12 = pnand %p1433_p11, %p1429_p8 }
 0x4ce   : > { %1437 = shalt.err (!%p1434_p12)
}
 0x4cf   : > { %1342 = dma.vmem_to_hbm [thread:$0]  (%p1585_p5), %s1139_s10, 128, %s1136_s9, %s1112_s11   ;;  %v1249_v44 = vld [vmem:[%s1807_s3] ss:$0 sm:$0xff] }
 0x4d0   : > { %s219_s13 = scalar_lea.vmem [#allocation2], %s1233_s12  ;;  %s1767_s26 = scalar_lea.hbm %s1808_s4, %s1253_s6 }
 0x4d1   : > { %s1125_s17 = sshll.u32 %s219_s13, 4  ;;  %s1107_s9 = scalar_lea.sflag [#allocation3], %s1727_s30  ;;  %s1126_s17 = int_to_ptr.vmem [resolvable:$true] %s1125_s17 }
 0x4d2   : > { %s1438_s10 = scalar_lea.vmem %s1126_s17, 128  ;;  %s1516_s12 = smov [#allocation2]  }
 0x4d3   : > { %p1439_p13 = scmp.ne.s32.totalorder %s1126_s17, %s1438_s10  ;;  %s1442_s11 = sshll.u32 %s1516_s12, 4  ;;  %s1443_s11 = int_to_ptr.vmem [resolvable:$false] %s1442_s11 }
 0x4d4   : > { %s1444_s15 = scalar_lea.vmem %s1443_s11, 256  ;;  %p1445_p2 = scmp.lt.s32.totalorder %s1126_s17, %s1443_s11 }
 0x4d5   : > { %p1440_p0 = pnand %p1439_p13, %p1585_p5  ;;  %p1446_p3 = scmp.lt.s32.totalorder %s1444_s15, %s1438_s10 }
 0x4d7   : > { %p1441_p1 = pneg %p1440_p0  ;;  %p1447_p4 = por %p1446_p3, %p1445_p2 }
 0x4d9   : > { %p1448_p7 = pnand %p1447_p4, %p1441_p1 }
 0x57e   : > { %v1101_v45 = vpop.f32.mrf.mxu0 }
 0x57f   : > { %v1102_v46 = vadd.f32 %v1249_v44, %v1101_v45 }
 0x580   : > { %v1340_v47 = vpop.f32.mrf.mxu0 }
 0x581   : > { %1105 = vst.msk [vmem:[%s219_s13] sm:$0xff] %vm240_vm0, %v1102_v46 }
 0x582   : > { %1451 = shalt.err (!%p1448_p7)
}
 0x583   : > { %s1452_s22 = scalar_lea.hbm %s1767_s26, 128  ;;  %s1456_s7 = scalar_lea.hbm %s1808_s4, 256 }
 0x584   : > { %p1453_p8 = scmp.ne.s32.totalorder %s1767_s26, %s1452_s22  ;;  %p1457_p11 = scmp.lt.s32.totalorder %s1767_s26, %s1808_s4 }
 0x585   : > { %p1458_p12 = scmp.lt.s32.totalorder %s1456_s7, %s1452_s22 }
 0x586   : > { %p1454_p9 = pnand %p1453_p8, %p1585_p5 }
 0x587   : > { %p1459_p13 = por %p1458_p12, %p1457_p11 }
 0x588   : > { %p1455_p10 = pneg %p1454_p9 }
 0x58a   : > { %p1460_p0 = pnand %p1459_p13, %p1455_p10 }
 0x58c   : > { %1463 = shalt.err (!%p1460_p0)
}
 0x58d   : > { %1341 = dma.vmem_to_hbm [thread:$0]  (%p1585_p5), %s1126_s17, 128, %s1767_s26, %s1107_s9  }
 0x58e PF: > { %p1352_p1 = scmp.ge.s32.totalorder %s1502_s21, 2  ;;  %s1150_s16 = sand.u32 1, %s1490_s18  }
 0x58f   : > { %s1151_s13 = scalar_lea.sflag [#allocation3], %s1150_s16 }
 0x590   : > { %p1346_p2 = pnand %p1352_p1, %p1589_p6 }
 0x592   : > { %p1347_p3 = pneg %p1346_p2 }
 0x594   : > { %1481 = dma.done.wait (%p1347_p3), %s1151_s13, 128  }
 0x595   : > { %1483 = vsyncadd (%p1347_p3), %s1151_s13, 4294967168  ;;  %s1160_s23 = scalar_lea.sflag [#allocation5], %s1150_s16 }
 0x596   : > { %1485 = dma.done.wait (%p1347_p3), %s1160_s23, 128  }
 0x597   : > { %1487 = vsyncadd (%p1347_p3), %s1160_s23, 4294967168  ;;  %p19_p5 = scmp.ge.s32.totalorder %s1572_s24, 4   ;;  %s1812_s18 = smov %s1494_s19 }
 0x598   : > { %s1813_s19 = smov %s1498_s20  ;;  %s1814_s20 = smov %s1583_s27 }
 0x599   : > { %s1815_s21 = smov %s1572_s24  ;;  %21 = sbr.rel (!%p19_p5) target bundleno = 5 (0x5), region = 88 }
 0x59e   :  { %1165 = vsyncpa [#allocation3], 1 }
 0x59f   :  { %1167 = vsyncpa [#allocation3 + $0x1], 1 }
 0x5a0   :  { %1168 = vsyncpa [#allocation5], 1 }
 0x5a1   :  { %1170 = vsyncpa [#allocation5 + $0x1], 1 }

</bundles_post_ra>
